<compile_context>
chip_gen: v7x
topology: tpu7x:2x2x1
jax: 0.10.0
libtpu: 0.0.40
codegen_flags: <defaults>
</compile_context>

<pallas_src>
import functools
import math

import jax
import jax.numpy as jnp
from jax.experimental import pallas as pl
from jax.experimental.pallas import tpu as pltpu

# ~4 MiB per x/out tile: >=85% of HBM roofline in measured tiled-copy data;
# 4 live buffers (double-buffered in + out) ~ 16 MiB, well under the limit.
_TARGET_TILE_BYTES = 4 * 1024 * 1024
# Safe scoped-VMEM request on v5e/v6e (128 MiB physical) and v7x (64 MiB/TC).
_VMEM_LIMIT_BYTES = 48 * 1024 * 1024


def _drop_path_kernel_per_sample(mask_ref, x_ref, o_ref):
    """mask_ref: VMEM (1, 1, 1) keep/scale for this sample (in x dtype).
    x_ref / o_ref: VMEM (1, TR, C) sublane/lane-dense per-sample tile."""
    o_ref[...] = x_ref[...] * mask_ref[0, 0, 0]


def _drop_path_kernel_batched(mask_ref, x_ref, o_ref):
    """mask_ref: VMEM (B, 1) per-sample keep/scale (in x dtype).
    x_ref / o_ref: VMEM (B, TF) lane-dense feature tile."""
    o_ref[...] = x_ref[...] * mask_ref[...]


@functools.partial(jax.jit, static_argnames=("keep_prob", "scale_by_keep"))
def _drop_path_core(x, key, *, keep_prob, scale_by_keep):
    B = x.shape[0]
    F = math.prod(x.shape[1:])
    itemsize = jnp.dtype(x.dtype).itemsize

    # Per-sample keep mask, computed once in the wrapper (not per grid step),
    # rounded into x's dtype to match torch's in-dtype bernoulli_/div_ behavior.
    keep = jax.random.bernoulli(key, p=keep_prob, shape=(B,))
    scale = (1.0 / keep_prob) if (scale_by_keep and keep_prob > 0.0) else 1.0
    mask = keep.astype(x.dtype) * jnp.asarray(scale, x.dtype)

    cost = pl.CostEstimate(
        flops=B * F, transcendentals=0,
        bytes_accessed=2 * B * F * itemsize + B * itemsize)

    if F % 128 == 0:
        # ---- per-sample (B, R, C) layout: sublane/lane-dense for any B ----
        C = 128
        for k in (16, 8, 4, 2, 1):              # widest lane-dense factor of F
            if F % (128 * k) == 0:
                C = 128 * k
                break
        R = F // C
        x3 = x.reshape(B, R, C)
        mask3 = mask.reshape(B, 1, 1)

        # Sublane tile sized purely by bytes (no lane cap).
        tr = max(1, _TARGET_TILE_BYTES // (C * itemsize))
        if tr >= R:
            tr = R                               # full dim -> always legal
        else:
            tr = max(8, (tr // 8) * 8)           # multiple of 8 sublanes
        # Keep >= 4 grid steps when possible so v7x's 2 TCs each get work.
        if B * pl.cdiv(R, tr) < 4 and R >= 16:
            want_tiles = pl.cdiv(4, B)
            cap = max(8, ((pl.cdiv(R, want_tiles) + 7) // 8) * 8)
            tr = min(tr, cap)

        grid = (B, pl.cdiv(R, tr))
        out = pl.pallas_call(
            _drop_path_kernel_per_sample,
            out_shape=jax.ShapeDtypeStruct((B, R, C), x.dtype),
            grid=grid,
            in_specs=[
                pl.BlockSpec((1, 1, 1), lambda b, j: (b, 0, 0)),   # mask[b]
                pl.BlockSpec((1, tr, C), lambda b, j: (b, j, 0)),  # x tile
            ],
            out_specs=pl.BlockSpec((1, tr, C), lambda b, j: (b, j, 0)),
            compiler_params=pltpu.CompilerParams(
                dimension_semantics=("parallel", "parallel"),
                vmem_limit_bytes=_VMEM_LIMIT_BYTES),
            cost_estimate=cost,
        )(mask3, x3)
        return out.reshape(x.shape)

    # ---- fallback: (B, F) layout, ragged last block (no jnp.pad / slice) ----
    x2 = x.reshape(B, F)
    mask2 = mask.reshape(B, 1)
    # Account for sublane padding of the (B, tf) VMEM tile when sizing by bytes.
    pack = 8 * (4 // itemsize)                   # f32->8, bf16->16, int8->32
    rows_pad = pl.cdiv(B, pack) * pack
    tf = (_TARGET_TILE_BYTES // max(1, rows_pad * itemsize)) // 128 * 128
    tf = max(128, tf)
    if tf >= F:
        tf = F                                   # single full block -> legal
    out = pl.pallas_call(
        _drop_path_kernel_batched,
        out_shape=jax.ShapeDtypeStruct((B, F), x.dtype),
        grid=(pl.cdiv(F, tf),),
        in_specs=[
            pl.BlockSpec((B, 1), lambda j: (0, 0)),   # mask, resident
            pl.BlockSpec((B, tf), lambda j: (0, j)),  # x feature tile
        ],
        out_specs=pl.BlockSpec((B, tf), lambda j: (0, j)),
        compiler_params=pltpu.CompilerParams(
            dimension_semantics=("parallel",),
            vmem_limit_bytes=_VMEM_LIMIT_BYTES),
        cost_estimate=cost,
    )(mask2, x2)
    return out.reshape(x.shape)


def drop_path_pallas(x, drop_prob: float, *, key=None, seed: int = 0,
                     training: bool = True, scale_by_keep: bool = True):
    """JAX/Pallas equivalent of torch drop_path(x, drop_prob, training, scale_by_keep).

    Pass a fresh `key` (preferred) or a distinct `seed` per call so the drop
    masks are actually stochastic across layers/steps.
    """
    if drop_prob == 0.0 or not training:
        return x
    if key is None:
        key = jax.random.PRNGKey(seed)
    keep_prob = 1.0 - drop_prob
    return _drop_path_core(x, key, keep_prob=keep_prob, scale_by_keep=scale_by_keep)


class DropPath:
    """Mirror of the PyTorch DropPath module (forward only)."""

    def __init__(self, drop_prob: float = 0.0, scale_by_keep: bool = True):
        self.drop_prob = drop_prob
        self.scale_by_keep = scale_by_keep
        self.training = True  # torch modules default to train mode

    def __call__(self, x, *, key=None, seed: int = 0):
        return drop_path_pallas(
            x,
            self.drop_prob,
            key=key,
            seed=seed,
            training=self.training,
            scale_by_keep=self.scale_by_keep,
        )


if __name__ == "__main__":
    import numpy as np

    key = jax.random.PRNGKey(0)
    # Small NCHW input consistent with typical DropPath usage.
    x = jax.random.normal(key, (2, 4, 16, 16), dtype=jnp.float32)

    # Training mode: stochastic per-sample drop with 1/keep_prob rescale.
    mod = DropPath(drop_prob=0.25, scale_by_keep=True)
    y = jax.block_until_ready(mod(x, seed=123))

    # Sanity: every sample's output is either all-zero or x / keep_prob.
    keep_prob = 1.0 - 0.25
    xn, yn = np.asarray(x), np.asarray(y)
    for b in range(xn.shape[0]):
        zero_ok = np.allclose(yn[b], 0.0)
        scaled_ok = np.allclose(yn[b], xn[b] / keep_prob, rtol=1e-5, atol=1e-5)
        assert zero_ok or scaled_ok, f"sample {b}: unexpected drop-path output"

    # Ragged-feature fallback path (flattened features not a multiple of 128).
    x_r = jax.random.normal(jax.random.PRNGKey(1), (2, 3, 7, 5), dtype=jnp.float32)
    y_r = jax.block_until_ready(drop_path_pallas(x_r, 0.5, seed=7))
    xrn, yrn = np.asarray(x_r), np.asarray(y_r)
    for b in range(xrn.shape[0]):
        zero_ok = np.allclose(yrn[b], 0.0)
        scaled_ok = np.allclose(yrn[b], xrn[b] / 0.5, rtol=1e-5, atol=1e-5)
        assert zero_ok or scaled_ok, f"ragged sample {b}: unexpected output"

    # Eval mode (or drop_prob == 0): identity.
    mod.training = False
    y_eval = jax.block_until_ready(mod(x, seed=123))
    assert np.allclose(np.asarray(y_eval), xn)

    print("KERNEL_OK")
</pallas_src>

<mosaic_0001>
module attributes {stable_mosaic.version = 11 : i64} {
  func.func @_drop_path_kernel_per_sample(%arg0: i32, %arg1: i32, %arg2: memref<1x1x1xf32, #tpu.memory_space<vmem>>, %arg3: memref<1x1x1024xf32, #tpu.memory_space<vmem>>, %arg4: memref<1x1x1024xf32, #tpu.memory_space<vmem>>) attributes {dimension_semantics = [#tpu.dimension_semantics<parallel>, #tpu.dimension_semantics<parallel>], iteration_bounds = array<i64: 2, 1>, scalar_prefetch = 0 : i64, scratch_operands = 0 : i64, tpu.core_type = #tpu.core_type<tc>, window_params = [{transform_indices = @transform_0, window_bounds = array<i64: 1, 1, 1>}, {transform_indices = @transform_1, window_bounds = array<i64: 1, 1, 1024>}, {transform_indices = @transform_2, window_bounds = array<i64: 1, 1, 1024>}]} {
    %c0 = arith.constant 0 : index
    %c0_0 = arith.constant 0 : index
    %c0_1 = arith.constant 0 : index
    %0 = vector.load %arg3[%c0, %c0_0, %c0_1] : memref<1x1x1024xf32, #tpu.memory_space<vmem>>, vector<1x1x1024xf32>
    %c0_2 = arith.constant 0 : index
    %c0_3 = arith.constant 0 : index
    %c0_4 = arith.constant 0 : index
    %1 = vector.load %arg2[%c0_2, %c0_3, %c0_4] : memref<1x1x1xf32, #tpu.memory_space<vmem>>, vector<1x1x1xf32>
    %2 = vector.extract %1[0, 0, 0] : f32 from vector<1x1x1xf32>
    %3 = vector.broadcast %2 : f32 to vector<1x1x1024xf32>
    %4 = arith.mulf %0, %3 : vector<1x1x1024xf32>
    %c0_5 = arith.constant 0 : index
    %c0_6 = arith.constant 0 : index
    %c0_7 = arith.constant 0 : index
    %5 = vector.load %arg4[%c0_5, %c0_6, %c0_7] : memref<1x1x1024xf32, #tpu.memory_space<vmem>>, vector<1x1x1024xf32>
    tpu.vector_store %arg4[%c0_5, %c0_6, %c0_7], %4 {strides = array<i32>} : memref<1x1x1024xf32, #tpu.memory_space<vmem>>, vector<1x1x1024xf32>,
    return
  }
  func.func @transform_0(%arg0: i32, %arg1: i32) -> (i32, i32, i32) {
    %c0_i32 = arith.constant 0 : i32
    %c0_i32_0 = arith.constant 0 : i32
    %c0_i32_1 = arith.constant 0 : i32
    return %arg0, %c0_i32, %c0_i32_0 : i32, i32, i32
  }
  func.func @transform_1(%arg0: i32, %arg1: i32) -> (i32, i32, i32) {
    %c0_i32 = arith.constant 0 : i32
    %c0_i32_0 = arith.constant 0 : i32
    return %arg0, %arg1, %c0_i32 : i32, i32, i32
  }
  func.func @transform_2(%arg0: i32, %arg1: i32) -> (i32, i32, i32) {
    %c0_i32 = arith.constant 0 : i32
    %c0_i32_0 = arith.constant 0 : i32
    return %arg0, %arg1, %c0_i32 : i32, i32, i32
  }
}

</mosaic_0001>

<bundles_post_ra>
// kernel: _drop_path_core.1
= control target key start
LH: loop header
LB: loop body
LE: loop exit
PB: predicated region body
PF: predicated region fallthrough
CT: control target
= control target key end

     0   :  { %s361_s9 = smov 0   ;;  %s363_s10 = smov 0   ;;  %s385_s0 = inlined_call_operand.vmem [shape: f32[2,1,1], index: 0, kind: input, shape index: {}]   ;;  %s386_s1 = inlined_call_operand.vmem [shape: f32[2,1,1024], index: 1, kind: input, shape index: {}]   ;;  %s387_s2 = inlined_call_operand.vmem [shape: f32[2,1,1024], index: 2, kind: output, shape index: {}]  }
   0x1   :  { %s365_s11 = smov 0  }
   0x2 LB: > { %s24_s12 = sadd.s32 1, %s340_s10  ;;  %p291_p0 = scmp.ge.s32.totalorder %s344_s11, 1  ;;  %s344_s11 = sphi %s365_s11, %s12_s11   ;;  %s340_s10 = sphi %s363_s10, %s389_s10   ;;  %s336_s9 = sphi %s361_s9, %s388_s9  }
   0x3   : > { %p26_p1 = scmp.ge.s32.totalorder %s24_s12, 2  ;;  %p139_p2 = scmp.lt.s32.totalorder %s344_s11, 3 }
   0x5   : > { %s391_s12 = smov (%p26_p1, %s24_s12), 0  ;;  %p140_p3 = pnand %p291_p0, %p139_p2 }
   0x6   : > { %p170_p4 = scmp.lt.s32.totalorder (!%p140_p3), %s336_s9, 1 }
   0x7   : > { %143 = sbr.rel (%p140_p3) target bundleno = 71 (0x47), region = 28 }
   0xe   : > { %s393_s9 = smov (!%p170_p4, %s336_s9), 1 }
   0xf   : > { %s172_s15 = scalar_lea.vmem %s385_s0, %s393_s9  ;;  %s292_s16 = sshll.u32 %s393_s9, 3 }
  0x10   : > { %v190_v0 = vld [vmem:[%s172_s15] sm:$0x1]  ;;  %s180_s19 = scalar_lea.vmem %s386_s1, %s292_s16  ;;  %s188_s23 = scalar_lea.vmem %s387_s2, %s292_s16 }
  0x11   : > { %296 = vpush %v190_v0  ;;  %v189_v1 = vld [vmem:[%s180_s19] sm:$0xff] }
  0x42   : > { %s297_s20 = spop %296 }
  0x43   : > { %v192_v2 = vstv %s297_s20 }
  0x44   : > { %v193_v3 = vmul.f32 %v192_v2, %v189_v1 }
  0x46   : > { %194 = vst [vmem:[%s188_s23] sm:$0xff] %v193_v3 }
  0x47 PF: > { %s12_s11 = sadd.s32 1, %s344_s11   ;;  %s388_s9 = smov %s340_s10 }
  0x48   : > { %p9_p5 = scmp.ge.s32.totalorder %s12_s11, 4   ;;  %s389_s10 = smov %s391_s12 }
  0x4a   :  { %11 = sbr.rel (!%p9_p5) target bundleno = 2 (0x2), region = 61 }

</bundles_post_ra>
